<compile_context>
chip_gen: v7x
topology: tpu7x:2x2x1
jax: 0.10.0
libtpu: 0.0.40
codegen_flags: <defaults>
</compile_context>

<pallas_src>
import functools

import jax
import jax.numpy as jnp
from jax import lax
from jax.experimental import pallas as pl
from jax.experimental.pallas import tpu as pltpu

NEG_SLOPE = 0.01   # torch LeakyReLU / F.leaky_relu default
BN_EPS = 1e-5      # BatchNorm default eps
GIN_EPS = 0.0      # GINConv default eps
LANE = 128
NEG_BIG = -1e30    # fills padded gumbel columns so they never win the argmax


# ---------------------------------------------------------------------------
# Kernel 1: GIN aggregation + 2-layer MLP, plus per-tile BatchNorm partials.
# Grid: node-row tiles ("parallel").
# ---------------------------------------------------------------------------
def gin_mlp_kernel(x_ref, adj_ref, w1_ref, b1_ref, w2_ref, b2_ref,
                   h_ref, stats_ref, *, tile_n, n_real):
    i = pl.program_id(0)
    row0 = pl.multiple_of(i * tile_n, tile_n)

    x_tile = x_ref[pl.ds(row0, tile_n), :]            # [tile_n, Fp] f32 (self term)
    x_bf = x_ref[...].astype(jnp.bfloat16)            # full x, bf16 MXU operand

    # GIN aggregation for this row stripe: adj[rows, :] @ x + (1 + eps) * x[rows]
    agg = jnp.dot(adj_ref[...], x_bf, preferred_element_type=jnp.float32)
    agg = agg + (1.0 + GIN_EPS) * x_tile

    # MLP: Linear -> LeakyReLU -> Linear (f32)
    h = jnp.dot(agg, w1_ref[...], preferred_element_type=jnp.float32) + b1_ref[...]
    h = jnp.where(h > 0, h, NEG_SLOPE * h)
    h = jnp.dot(h, w2_ref[...], preferred_element_type=jnp.float32) + b2_ref[...]
    h_ref[...] = h

    # Per-tile BatchNorm partials (sum, sum of squares), padded rows masked out.
    rows = row0 + lax.broadcasted_iota(jnp.int32, (tile_n, 1), 0)
    valid = (rows < n_real).astype(jnp.float32)
    hm = h * valid
    s = jnp.sum(hm, axis=0, keepdims=True)
    sq = jnp.sum(hm * hm, axis=0, keepdims=True)
    stats_ref[0, :, :] = jnp.concatenate([s, sq], axis=0)        # [2, Fp]


def gin_mlp(x_p, adj_bf, w1, b1, w2, b2, *, tile_n, n_real, vmem_limit):
    n_pad, fp = x_p.shape
    num_tiles = n_pad // tile_n
    out_shape = (
        jax.ShapeDtypeStruct((n_pad, fp), jnp.float32),          # h (pre-BN)
        jax.ShapeDtypeStruct((num_tiles, 2, fp), jnp.float32),   # per-tile stats
    )
    return pl.pallas_call(
        functools.partial(gin_mlp_kernel, tile_n=tile_n, n_real=n_real),
        out_shape=out_shape,
        grid=(num_tiles,),
        in_specs=[
            pl.BlockSpec((n_pad, fp), lambda i: (0, 0)),        # x: VMEM-resident
            pl.BlockSpec((tile_n, n_pad), lambda i: (i, 0)),    # adj row stripe (bf16)
            pl.BlockSpec((fp, fp), lambda i: (0, 0)),           # w1
            pl.BlockSpec((1, fp), lambda i: (0, 0)),            # b1
            pl.BlockSpec((fp, fp), lambda i: (0, 0)),           # w2
            pl.BlockSpec((1, fp), lambda i: (0, 0)),            # b2
        ],
        out_specs=(
            pl.BlockSpec((tile_n, fp), lambda i: (i, 0)),
            pl.BlockSpec((1, 2, fp), lambda i: (i, 0, 0)),
        ),
        compiler_params=pltpu.CompilerParams(
            dimension_semantics=("parallel",),
            vmem_limit_bytes=vmem_limit),
    )(x_p, adj_bf, w1, b1, w2, b2)


# ---------------------------------------------------------------------------
# Kernel 2: BatchNorm apply + hard Gumbel-Softmax + global_add_pool (+ fused
# final dense classifier on the last tile) + leaky_relu carried activation.
# Grid: node-row tiles ("arbitrary" — gc/out are reductions over the grid).
# ---------------------------------------------------------------------------
def bn_gumbel_pool_kernel(h_ref, scale_ref, shift_ref, gumbel_ref, pool_ref,
                          wd_ref, bd_ref,
                          x_next_ref, nc_ref, gc_ref, out_ref,
                          *, tau, tile_n, n_real):
    i = pl.program_id(0)

    @pl.when(i == 0)
    def _():
        gc_ref[...] = jnp.zeros_like(gc_ref)
        out_ref[...] = jnp.zeros_like(out_ref)

    # BatchNorm folded into a single per-feature scale/shift (computed in glue).
    h_bn = h_ref[...] * scale_ref[...] + shift_ref[...]

    # Hard Gumbel-Softmax forward value: one-hot(argmax((h + g) / tau)).
    # (Exact-tie break dropped: ties are measure-zero with continuous Gumbel noise.)
    logits = (h_bn + gumbel_ref[...]) * (1.0 / tau)
    m = jnp.max(logits, axis=-1, keepdims=True)
    nc = (logits >= m).astype(jnp.float32)
    nc_ref[...] = nc

    # global_add_pool accumulated across node tiles (padded node cols of pool = 0).
    gc_ref[...] += jnp.dot(pool_ref[...], nc, preferred_element_type=jnp.float32)

    # Carried activation for the next layer: leaky_relu(BN out), padded rows zeroed.
    rows = i * tile_n + lax.broadcasted_iota(jnp.int32, (tile_n, 1), 0)
    valid = (rows < n_real).astype(jnp.float32)
    x_next_ref[...] = jnp.where(h_bn > 0, h_bn, NEG_SLOPE * h_bn) * valid

    # Fused final dense classifier on the completed graph concept.
    @pl.when(i == pl.num_programs(0) - 1)
    def _():
        out_ref[...] = (jnp.dot(gc_ref[...], wd_ref[...],
                                preferred_element_type=jnp.float32) + bd_ref[...])


def bn_gumbel_pool(h, scale, shift, gumbel, pool, wd, bd, *,
                   tau, tile_n, n_real, vmem_limit):
    n_pad, fp = h.shape
    g_pad = pool.shape[0]
    cp = wd.shape[1]
    num_tiles = n_pad // tile_n
    out_shape = (
        jax.ShapeDtypeStruct((n_pad, fp), jnp.float32),   # x_next
        jax.ShapeDtypeStruct((n_pad, fp), jnp.float32),   # node_concept
        jax.ShapeDtypeStruct((g_pad, fp), jnp.float32),   # graph_concept
        jax.ShapeDtypeStruct((g_pad, cp), jnp.float32),   # classifier logits
    )
    return pl.pallas_call(
        functools.partial(bn_gumbel_pool_kernel, tau=tau,
                          tile_n=tile_n, n_real=n_real),
        out_shape=out_shape,
        grid=(num_tiles,),
        in_specs=[
            pl.BlockSpec((tile_n, fp), lambda i: (i, 0)),     # h tile
            pl.BlockSpec((1, fp), lambda i: (0, 0)),          # BN scale
            pl.BlockSpec((1, fp), lambda i: (0, 0)),          # BN shift
            pl.BlockSpec((tile_n, fp), lambda i: (i, 0)),     # gumbel tile
            pl.BlockSpec((g_pad, tile_n), lambda i: (0, i)),  # pool columns
            pl.BlockSpec((fp, cp), lambda i: (0, 0)),         # dense W
            pl.BlockSpec((1, cp), lambda i: (0, 0)),          # dense b
        ],
        out_specs=(
            pl.BlockSpec((tile_n, fp), lambda i: (i, 0)),
            pl.BlockSpec((tile_n, fp), lambda i: (i, 0)),
            pl.BlockSpec((g_pad, fp), lambda i: (0, 0)),      # accumulated over tiles
            pl.BlockSpec((g_pad, cp), lambda i: (0, 0)),      # written on last tile
        ),
        compiler_params=pltpu.CompilerParams(
            dimension_semantics=("arbitrary",),
            vmem_limit_bytes=vmem_limit),
    )(h, scale, shift, gumbel, pool, wd, bd)


# ---------------------------------------------------------------------------
# Glue: padding helpers, parameter init, full forward pass
# ---------------------------------------------------------------------------
def _round_up(v, m):
    return ((v + m - 1) // m) * m


def _pick_tile(n_pad):
    for t in (512, 256, 128):
        if n_pad % t == 0:
            return t
    return n_pad


def _pad2(a, rows, cols, fill=0.0):
    out = jnp.full((rows, cols), fill, a.dtype)
    return out.at[:a.shape[0], :a.shape[1]].set(a)


def _vmem_limit_bytes():
    try:
        cap = pltpu.get_tpu_info().vmem_capacity_bytes
        return int(min(96 << 20, (cap * 3) // 4))
    except Exception:
        return None


def init_params(key, in_features, emb_size, n_classes, n_layers):
    """Deterministic init. Linear weights stored as [in, out] (x @ W + b)."""
    def linear(k, fan_in, fan_out):
        kw, kb = jax.random.split(k)
        bound = 1.0 / jnp.sqrt(fan_in)
        w = jax.random.uniform(kw, (fan_in, fan_out), jnp.float32, -bound, bound)
        b = jax.random.uniform(kb, (1, fan_out), jnp.float32, -bound, bound)
        return w, b

    keys = jax.random.split(key, 2 * n_layers + 1)
    layers = []
    in_size = in_features
    for i in range(n_layers):
        w1, b1 = linear(keys[2 * i], in_size, emb_size)
        w2, b2 = linear(keys[2 * i + 1], emb_size, emb_size)
        layers.append(dict(
            w1=w1, b1=b1, w2=w2, b2=b2,
            gamma=jnp.ones((1, emb_size), jnp.float32),
            beta=jnp.zeros((1, emb_size), jnp.float32),
        ))
        in_size = emb_size
    dw, db = linear(keys[-1], emb_size, n_classes)
    return dict(layers=layers, dense_w=dw, dense_b=db)


def hierarchical_gcn_forward(x, edge_index, batch, params, gumbels,
                             num_graphs, tau=1.0):
    n, f_in = x.shape
    emb = params["layers"][0]["w1"].shape[1]
    n_classes = params["dense_w"].shape[1]

    fp = _round_up(max(f_in, emb), LANE)          # lane-padded feature width
    cp = _round_up(n_classes, LANE)               # lane-padded class width
    n_pad = _round_up(max(n, LANE), LANE)
    g_pad = _round_up(max(num_graphs, 8), 8)
    tile_n = _pick_tile(n_pad)
    vmem_limit = _vmem_limit_bytes()

    # Dense adjacency A[dst, src] in bf16 (exact for small integer edge counts).
    # TODO(synk): for large sparse graphs replace the dense adjacency with a
    # scalar-prefetch CSR gather so aggregation is O(E*F) instead of dense O(N^2).
    src, dst = edge_index[0], edge_index[1]
    adj = jnp.zeros((n_pad, n_pad), jnp.float32).at[dst, src].add(1.0)
    adj = adj.astype(jnp.bfloat16)

    # Pooling matrix P[g, i] = 1 if node i is in graph g (padded cols stay 0).
    pool = jnp.zeros((g_pad, n_pad), jnp.float32).at[batch, jnp.arange(n)].set(1.0)

    # Lane-padded final classifier params (fused into kernel 2's last grid step).
    wd = _pad2(params["dense_w"], fp, cp)
    bd = _pad2(params["dense_b"], 1, cp)

    x_p = _pad2(x, n_pad, fp)

    node_concepts, graph_concepts = [], []
    out_p = None
    for li, lp in enumerate(params["layers"]):
        w1 = _pad2(lp["w1"], fp, fp)
        b1 = _pad2(lp["b1"], 1, fp)
        w2 = _pad2(lp["w2"], fp, fp)
        b2 = _pad2(lp["b2"], 1, fp)
        gamma = _pad2(lp["gamma"], 1, fp, fill=1.0)
        beta = _pad2(lp["beta"], 1, fp)
        # Gumbel noise: padded feature columns get -1e30 so they never win the
        # argmax; padded rows are pooled with zero weight and sliced away.
        gum = jnp.full((n_pad, fp), NEG_BIG, jnp.float32).at[:n, :emb].set(gumbels[li])

        # Pass 1: GIN aggregation + MLP + per-tile BatchNorm partials.
        h, stats_p = gin_mlp(x_p, adj, w1, b1, w2, b2,
                             tile_n=tile_n, n_real=n, vmem_limit=vmem_limit)

        # Tiny cross-tile reduce; fold BN (training-mode biased stats) into one
        # per-feature scale/shift: var = E[h^2] - mean^2.
        stats = jnp.sum(stats_p, axis=0)                         # [2, Fp]
        mean = stats[0:1] / n
        var = jnp.maximum(stats[1:2] / n - mean * mean, 0.0)
        scale = gamma * lax.rsqrt(var + BN_EPS)
        shift = beta - mean * scale

        # Pass 2: BN + hard Gumbel-Softmax + pooling + leaky_relu (+ fused dense).
        x_p, nc_p, gc_p, out_p = bn_gumbel_pool(
            h, scale, shift, gum, pool, wd, bd,
            tau=tau, tile_n=tile_n, n_real=n, vmem_limit=vmem_limit)

        node_concepts.append(nc_p[:n, :emb])
        graph_concepts.append(gc_p[:num_graphs, :emb])

    out = out_p[:num_graphs, :n_classes]
    return out, node_concepts, graph_concepts


if __name__ == "__main__":
    # small shapes consistent with the module's forward
    N, F_IN, EMB, N_CLASSES, N_LAYERS, G, E = 32, 16, 32, 4, 3, 2, 64
    TAU = 1.0

    key = jax.random.PRNGKey(0)
    ks = iter(jax.random.split(key, 16))

    x = jax.random.normal(next(ks), (N, F_IN), jnp.float32)
    src = jax.random.randint(next(ks), (E,), 0, N, dtype=jnp.int32)
    dst = jax.random.randint(next(ks), (E,), 0, N, dtype=jnp.int32)
    edge_index = jnp.stack([src, dst])                 # [2, E]
    batch = jnp.concatenate([jnp.zeros(N // 2, jnp.int32),
                             jnp.ones(N - N // 2, jnp.int32)])  # [N]

    params = init_params(next(ks), F_IN, EMB, N_CLASSES, N_LAYERS)
    # Gumbel(0,1) noise for each layer's gumbel_softmax (precomputed glue randomness)
    gumbels = [jax.random.gumbel(next(ks), (N, EMB), jnp.float32)
               for _ in range(N_LAYERS)]

    out, node_concepts, graph_concepts = hierarchical_gcn_forward(
        x, edge_index, batch, params, gumbels, num_graphs=G, tau=TAU)

    jax.block_until_ready((out, node_concepts, graph_concepts))
    assert out.shape == (G, N_CLASSES)
    assert all(nc.shape == (N, EMB) for nc in node_concepts)
    assert all(gc.shape == (G, EMB) for gc in graph_concepts)
    print("KERNEL_OK")
</pallas_src>

<mosaic_0001>
module attributes {stable_mosaic.version = 11 : i64} {
  func.func @gin_mlp_kernel(%arg0: i32, %arg1: memref<128x128xf32, #tpu.memory_space<vmem>>, %arg2: memref<128x128xbf16, #tpu.memory_space<vmem>>, %arg3: memref<128x128xf32, #tpu.memory_space<vmem>>, %arg4: memref<1x128xf32, #tpu.memory_space<vmem>>, %arg5: memref<128x128xf32, #tpu.memory_space<vmem>>, %arg6: memref<1x128xf32, #tpu.memory_space<vmem>>, %arg7: memref<128x128xf32, #tpu.memory_space<vmem>>, %arg8: memref<1x2x128xf32, #tpu.memory_space<vmem>>) attributes {dimension_semantics = [#tpu.dimension_semantics<parallel>], iteration_bounds = array<i64: 1>, scalar_prefetch = 0 : i64, scratch_operands = 0 : i64, tpu.core_type = #tpu.core_type<tc>, window_params = [{pipeline_mode = #tpu.pipeline_mode<synchronous>, transform_indices = @transform_0, window_bounds = array<i64: 128, 128>}, {transform_indices = @transform_1, window_bounds = array<i64: 128, 128>}, {pipeline_mode = #tpu.pipeline_mode<synchronous>, transform_indices = @transform_2, window_bounds = array<i64: 128, 128>}, {pipeline_mode = #tpu.pipeline_mode<synchronous>, transform_indices = @transform_3, window_bounds = array<i64: 1, 128>}, {pipeline_mode = #tpu.pipeline_mode<synchronous>, transform_indices = @transform_4, window_bounds = array<i64: 128, 128>}, {pipeline_mode = #tpu.pipeline_mode<synchronous>, transform_indices = @transform_5, window_bounds = array<i64: 1, 128>}, {transform_indices = @transform_6, window_bounds = array<i64: 128, 128>}, {transform_indices = @transform_7, window_bounds = array<i64: 1, 2, 128>}]} {
    %c128_i32 = arith.constant 128 : i32
    %0 = arith.muli %arg0, %c128_i32 : i32
    %1 = tpu.assume_multiple %0, 128 : i32
    %2 = arith.index_cast %1 : i32 to index
    %c0 = arith.constant 0 : index
    %3 = vector.load %arg1[%2, %c0] : memref<128x128xf32, #tpu.memory_space<vmem>>, vector<128x128xf32>
    %c0_0 = arith.constant 0 : index
    %c0_1 = arith.constant 0 : index
    %4 = vector.load %arg1[%c0_0, %c0_1] : memref<128x128xf32, #tpu.memory_space<vmem>>, vector<128x128xf32>
    %5 = arith.truncf %4 : vector<128x128xf32> to vector<128x128xbf16>
    %c0_2 = arith.constant 0 : index
    %c0_3 = arith.constant 0 : index
    %6 = vector.load %arg2[%c0_2, %c0_3] : memref<128x128xbf16, #tpu.memory_space<vmem>>, vector<128x128xbf16>
    %cst = arith.constant dense<0.000000e+00> : vector<128x128xf32>
    %7 = tpu.matmul %6, %5, %cst {dimension_numbers = #tpu.dot_dimension_numbers<[1], [0], [0], [1], [0, 0, 1, 1], [], []>} : vector<128x128xbf16>, vector<128x128xbf16>, vector<128x128xf32> -> vector<128x128xf32>
    %cst_4 = arith.constant 1.000000e+00 : f32
    %8 = vector.broadcast %cst_4 : f32 to vector<128x128xf32>
    %9 = arith.mulf %8, %3 : vector<128x128xf32>
    %10 = arith.addf %7, %9 : vector<128x128xf32>
    %c0_5 = arith.constant 0 : index
    %c0_6 = arith.constant 0 : index
    %11 = vector.load %arg3[%c0_5, %c0_6] : memref<128x128xf32, #tpu.memory_space<vmem>>, vector<128x128xf32>
    %cst_7 = arith.constant dense<0.000000e+00> : vector<128x128xf32>
    %12 = tpu.matmul %10, %11, %cst_7 {dimension_numbers = #tpu.dot_dimension_numbers<[1], [0], [0], [1], [0, 0, 1, 1], [], []>} : vector<128x128xf32>, vector<128x128xf32>, vector<128x128xf32> -> vector<128x128xf32>
    %c0_8 = arith.constant 0 : index
    %c0_9 = arith.constant 0 : index
    %13 = vector.load %arg4[%c0_8, %c0_9] : memref<1x128xf32, #tpu.memory_space<vmem>>, vector<1x128xf32>
    %14 = vector.broadcast %13 : vector<1x128xf32> to vector<128x128xf32>
    %15 = arith.addf %12, %14 : vector<128x128xf32>
    %cst_10 = arith.constant 0.000000e+00 : f32
    %16 = vector.broadcast %cst_10 : f32 to vector<128x128xf32>
    %17 = arith.cmpf ogt, %15, %16 : vector<128x128xf32>
    %cst_11 = arith.constant 0.00999999977 : f32
    %18 = vector.broadcast %cst_11 : f32 to vector<128x128xf32>
    %19 = arith.mulf %18, %15 : vector<128x128xf32>
    %20 = arith.select %17, %15, %19 : vector<128x128xi1>, vector<128x128xf32>
    %c0_12 = arith.constant 0 : index
    %c0_13 = arith.constant 0 : index
    %21 = vector.load %arg5[%c0_12, %c0_13] : memref<128x128xf32, #tpu.memory_space<vmem>>, vector<128x128xf32>
    %cst_14 = arith.constant dense<0.000000e+00> : vector<128x128xf32>
    %22 = tpu.matmul %20, %21, %cst_14 {dimension_numbers = #tpu.dot_dimension_numbers<[1], [0], [0], [1], [0, 0, 1, 1], [], []>} : vector<128x128xf32>, vector<128x128xf32>, vector<128x128xf32> -> vector<128x128xf32>
    %c0_15 = arith.constant 0 : index
    %c0_16 = arith.constant 0 : index
    %23 = vector.load %arg6[%c0_15, %c0_16] : memref<1x128xf32, #tpu.memory_space<vmem>>, vector<1x128xf32>
    %24 = vector.broadcast %23 : vector<1x128xf32> to vector<128x128xf32>
    %25 = arith.addf %22, %24 : vector<128x128xf32>
    %c0_17 = arith.constant 0 : index
    %c0_18 = arith.constant 0 : index
    %26 = vector.load %arg7[%c0_17, %c0_18] : memref<128x128xf32, #tpu.memory_space<vmem>>, vector<128x128xf32>
    tpu.vector_store %arg7[%c0_17, %c0_18], %25 {strides = array<i32>} : memref<128x128xf32, #tpu.memory_space<vmem>>, vector<128x128xf32>,
    %27 = tpu.iota {dimensions = array<i32: 0>} : vector<128x1xi32>
    %28 = vector.broadcast %1 : i32 to vector<128x1xi32>
    %29 = arith.addi %28, %27 : vector<128x1xi32>
    %c32_i32 = arith.constant 32 : i32
    %30 = vector.broadcast %c32_i32 : i32 to vector<128x1xi32>
    %31 = arith.cmpi slt, %29, %30 : vector<128x1xi32>
    %32 = arith.extui %31 : vector<128x1xi1> to vector<128x1xi32>
    %33 = arith.sitofp %32 : vector<128x1xi32> to vector<128x1xf32>
    %34 = vector.broadcast %33 : vector<128x1xf32> to vector<128x128xf32>
    %35 = arith.mulf %25, %34 : vector<128x128xf32>
    %cst_19 = arith.constant dense<0.000000e+00> : vector<128xf32>
    %36 = vector.multi_reduction <add>, %35, %cst_19 [0] : vector<128x128xf32> to vector<128xf32>
    %37 = vector.shape_cast %36 : vector<128xf32> to vector<1x128xf32>
    %38 = arith.mulf %35, %35 : vector<128x128xf32>
    %cst_20 = arith.constant dense<0.000000e+00> : vector<128xf32>
    %39 = vector.multi_reduction <add>, %38, %cst_20 [0] : vector<128x128xf32> to vector<128xf32>
    %40 = vector.shape_cast %39 : vector<128xf32> to vector<1x128xf32>
    %41 = tpu.concatenate %37, %40 in 0 : vector<1x128xf32>, vector<1x128xf32> -> vector<2x128xf32>
    %c0_21 = arith.constant 0 : index
    %c0_22 = arith.constant 0 : index
    %c0_23 = arith.constant 0 : index
    %42 = vector.load %arg8[%c0_21, %c0_22, %c0_23] : memref<1x2x128xf32, #tpu.memory_space<vmem>>, vector<1x2x128xf32>
    %43 = vector.shape_cast %42 : vector<1x2x128xf32> to vector<2x128xf32>
    %44 = vector.shape_cast %41 : vector<2x128xf32> to vector<1x2x128xf32>
    tpu.vector_store %arg8[%c0_21, %c0_22, %c0_23], %44 {strides = array<i32>} : memref<1x2x128xf32, #tpu.memory_space<vmem>>, vector<1x2x128xf32>,
    return
  }
  func.func @transform_0(%arg0: i32) -> (i32, i32) {
    %c0_i32 = arith.constant 0 : i32
    %c0_i32_0 = arith.constant 0 : i32
    %c0_i32_1 = arith.constant 0 : i32
    return %c0_i32, %c0_i32_0 : i32, i32
  }
  func.func @transform_1(%arg0: i32) -> (i32, i32) {
    %c0_i32 = arith.constant 0 : i32
    %c0_i32_0 = arith.constant 0 : i32
    return %arg0, %c0_i32 : i32, i32
  }
  func.func @transform_2(%arg0: i32) -> (i32, i32) {
    %c0_i32 = arith.constant 0 : i32
    %c0_i32_0 = arith.constant 0 : i32
    %c0_i32_1 = arith.constant 0 : i32
    return %c0_i32, %c0_i32_0 : i32, i32
  }
  func.func @transform_3(%arg0: i32) -> (i32, i32) {
    %c0_i32 = arith.constant 0 : i32
    %c0_i32_0 = arith.constant 0 : i32
    %c0_i32_1 = arith.constant 0 : i32
    return %c0_i32, %c0_i32_0 : i32, i32
  }
  func.func @transform_4(%arg0: i32) -> (i32, i32) {
    %c0_i32 = arith.constant 0 : i32
    %c0_i32_0 = arith.constant 0 : i32
    %c0_i32_1 = arith.constant 0 : i32
    return %c0_i32, %c0_i32_0 : i32, i32
  }
  func.func @transform_5(%arg0: i32) -> (i32, i32) {
    %c0_i32 = arith.constant 0 : i32
    %c0_i32_0 = arith.constant 0 : i32
    %c0_i32_1 = arith.constant 0 : i32
    return %c0_i32, %c0_i32_0 : i32, i32
  }
  func.func @transform_6(%arg0: i32) -> (i32, i32) {
    %c0_i32 = arith.constant 0 : i32
    %c0_i32_0 = arith.constant 0 : i32
    return %arg0, %c0_i32 : i32, i32
  }
  func.func @transform_7(%arg0: i32) -> (i32, i32, i32) {
    %c0_i32 = arith.constant 0 : i32
    %c0_i32_0 = arith.constant 0 : i32
    %c0_i32_1 = arith.constant 0 : i32
    return %arg0, %c0_i32, %c0_i32_0 : i32, i32, i32
  }
}

</mosaic_0001>

<bundles_post_ra>
// kernel: tpu_custom_call.1
= control target key start
LH: loop header
LB: loop body
LE: loop exit
PB: predicated region body
PF: predicated region fallthrough
CT: control target
= control target key end

     0   :  { %13 = vsyncpa [#allocation3], 0  ;;  %s1599_s0 = inlined_call_operand.hbm [shape: f32[128,128], index: 0, kind: input, shape index: {}]   ;;  %s1600_s1 = inlined_call_operand.hbm [shape: bf16[128,128], index: 1, kind: input, shape index: {}]   ;;  %s1601_s2 = inlined_call_operand.hbm [shape: f32[128,128], index: 2, kind: input, shape index: {}]   ;;  %s1602_s3 = inlined_call_operand.vmem [shape: f32[1,128], index: 3, kind: input, shape index: {}]   ;;  %s1603_s4 = inlined_call_operand.hbm [shape: f32[128,128], index: 4, kind: input, shape index: {}]   ;;  %s1604_s5 = inlined_call_operand.vmem [shape: f32[1,128], index: 5, kind: input, shape index: {}]   ;;  %s1605_s6 = inlined_call_operand.hbm [shape: f32[128,128], index: 6, kind: output, shape index: {0}]   ;;  %s1606_s7 = inlined_call_operand.hbm [shape: f32[1,2,128], index: 7, kind: output, shape index: {1}]  }
   0x1   :  { %14 = vsyncpa [#allocation6], 0 }
   0x2   :  { %15 = vsyncpa [#allocation9], 0 }
   0x3   :  { %16 = vsyncpa [#allocation4], 0 }
   0x4   :  { %17 = vsyncpa [#allocation12], 0  ;;  %s1352_s24 = smov [#allocation5]   ;;  %s1210_s28 = scalar_lea.hbm %s1600_s1, 1024 }
   0x5   :  { %s35_s25 = sshll.u32 %s1352_s24, 4  ;;  %p1211_p0 = scmp.ne.s32.totalorder %s1600_s1, %s1210_s28  ;;  %s36_s25 = int_to_ptr.vmem [resolvable:$true] %s35_s25 }
   0x6   :  { %p1214_p1 = scmp.lt.u32.totalorder %s1210_s28, %s1600_s1 }
   0x8   :  { %p1216_p2 = pnand %p1214_p1, %p1211_p0 }
   0xa   :  { %1219 = shalt.err (!%p1216_p2)
}
   0xb   :  { %s1220_s10 = scalar_lea.vmem %s36_s25, 1024  ;;  %p1225_p4 = scmp.lt.s32.totalorder %s36_s25, %s36_s25 }
   0xc   :  { %p1221_p3 = scmp.ne.s32.totalorder %s36_s25, %s1220_s10  ;;  %p1226_p5 = scmp.lt.s32.totalorder %s1220_s10, %s1220_s10 }
   0xe   :  { %p1227_p6 = por %p1226_p5, %p1225_p4 }
  0x10   :  { %p1228_p7 = pnand %p1227_p6, %p1221_p3 }
  0x12   :  { %1231 = shalt.err (!%p1228_p7)
}
  0x13   :  { %s1353_s11 = smov 64   ;;  %s1354_s12 = smov 4  }
  0x14   :  { %41 = dma.hbm_to_vmem [thread:$0]  %s1600_s1, 1024, %s36_s25, [#allocation6], %s1353_s11, %s1353_s11, %s1354_s12  }
  0x15   :  { %s1355_s15 = smov [#allocation2]   ;;  %s1232_s19 = scalar_lea.hbm %s1599_s0, 2048 }
  0x16   :  { %s23_s16 = sshll.u32 %s1355_s15, 4  ;;  %p1233_p8 = scmp.ne.s32.totalorder %s1599_s0, %s1232_s19  ;;  %s24_s16 = int_to_ptr.vmem [resolvable:$true] %s23_s16 }
  0x17   :  { %p1236_p9 = scmp.lt.u32.totalorder %s1232_s19, %s1599_s0 }
  0x19   :  { %p1238_p10 = pnand %p1236_p9, %p1233_p8 }
  0x1b   :  { %1241 = shalt.err (!%p1238_p10)
}
  0x1c   :  { %s1242_s24 = scalar_lea.vmem %s24_s16, 2048  ;;  %p1247_p12 = scmp.lt.s32.totalorder %s24_s16, %s24_s16 }
  0x1d   :  { %p1243_p11 = scmp.ne.s32.totalorder %s24_s16, %s1242_s24  ;;  %p1248_p13 = scmp.lt.s32.totalorder %s1242_s24, %s1242_s24 }
  0x1f   :  { %p1249_p0 = por %p1248_p13, %p1247_p12 }
  0x21   :  { %p1250_p1 = pnand %p1249_p0, %p1243_p11 }
  0x23   :  { %1253 = shalt.err (!%p1250_p1)
}
  0x24   :  { %s1356_s1 = smov 128   ;;  %s1357_s25 = smov 8  }
  0x25   :  { %29 = dma.hbm_to_vmem [thread:$0]  %s1599_s0, 2048, %s24_s16, [#allocation3], %s1356_s1, %s1356_s1, %s1357_s25  }
  0x26   :  { %s1358_s28 = smov [#allocation7]   ;;  %s1359_s30 = smov [#allocation8]  }
  0x27   :  { %s47_s29 = sshll.u32 %s1358_s28, 4  ;;  %s61_s8 = sshll.u32 %s1359_s30, 4  ;;  %s48_s29 = int_to_ptr.vmem [resolvable:$true] %s47_s29  ;;  %s1429_s8 = int_to_ptr.vmem [resolvable:$true] %s61_s8 }
  0x28   :  { %s1254_s11 = scalar_lea.hbm %s1601_s2, 2048 }
  0x29   :  { %p1255_p2 = scmp.ne.s32.totalorder %s1601_s2, %s1254_s11  ;;  %p1258_p3 = scmp.lt.u32.totalorder %s1254_s11, %s1601_s2 }
  0x2b   :  { %p1260_p4 = pnand %p1258_p3, %p1255_p2 }
  0x2d   :  { %1263 = shalt.err (!%p1260_p4)
}
  0x2e   :  { %s1264_s0 = scalar_lea.vmem %s48_s29, 2048  ;;  %p1269_p6 = scmp.lt.s32.totalorder %s48_s29, %s48_s29 }
  0x2f   :  { %p1265_p5 = scmp.ne.s32.totalorder %s48_s29, %s1264_s0  ;;  %p1270_p7 = scmp.lt.s32.totalorder %s1264_s0, %s1264_s0 }
  0x31   :  { %p1271_p8 = por %p1270_p7, %p1269_p6 }
  0x33   :  { %p1272_p9 = pnand %p1271_p8, %p1265_p5 }
  0x35   :  { %1275 = shalt.err (!%p1272_p9)
}
  0x36   :  { %53 = dma.hbm_to_vmem [thread:$0]  %s1601_s2, 2048, %s48_s29, [#allocation6], %s1356_s1, %s1356_s1, %s1357_s25  }
  0x37   :  { %s1276_s20 = scalar_lea.hbm %s1603_s4, 2048 }
  0x38   :  { %p1277_p10 = scmp.ne.s32.totalorder %s1603_s4, %s1276_s20  ;;  %p1280_p11 = scmp.lt.u32.totalorder %s1276_s20, %s1603_s4 }
  0x3a   :  { %p1282_p12 = pnand %p1280_p11, %p1277_p10 }
  0x3c   :  { %1285 = shalt.err (!%p1282_p12)
}
  0x3d   :  { %s1286_s26 = scalar_lea.vmem %s1429_s8, 2048  ;;  %p1291_p0 = scmp.lt.s32.totalorder %s1429_s8, %s1429_s8 }
  0x3e   :  { %p1287_p13 = scmp.ne.s32.totalorder %s1429_s8, %s1286_s26  ;;  %p1292_p1 = scmp.lt.s32.totalorder %s1286_s26, %s1286_s26 }
  0x40   :  { %p1293_p2 = por %p1292_p1, %p1291_p0 }
  0x42   :  { %p1294_p3 = pnand %p1293_p2, %p1287_p13 }
  0x44   :  { %1297 = shalt.err (!%p1294_p3)
}
  0x45   :  { %67 = dma.hbm_to_vmem [thread:$0]  %s1603_s4, 2048, %s1429_s8, [#allocation9], %s1356_s1, %s1356_s1, %s1357_s25  }
  0x46   :  { %1342 = dma.done.wait [#allocation3], 2048  }
  0x47   :  { %1343 = vsyncadd [#allocation3], 4294965248 }
  0x48   :  { %1344 = dma.done.wait [#allocation6], 3072  }
  0x49   :  { %1345 = vsyncadd [#allocation6], 4294964224 }
  0x4a   :  { %1346 = dma.done.wait [#allocation9], 2048  }
  0x4b   :  { %1347 = vsyncadd [#allocation9], 4294965248  ;;  %v1466_v0 = vld [vmem:[#allocation2] sm:$0xff]  ;;  %v1468_v1 = vld [vmem:[#allocation2 + $0x8] sm:$0xff] }
  0x4c   :  { %v1470_v2 = vld [vmem:[#allocation2 + $0x10] sm:$0xff]  ;;  %v117_v3 = vpack.c.bf16 %v1468_v1, %v1466_v0  ;;  %v1474_v4 = vld [vmem:[#allocation2 + $0x18] sm:$0xff]  ;;  %v1478_v6 = vld [vmem:[#allocation2 + $0x20] sm:$0xff] }
  0x4d   :  { %v118_v5 = vpack.c.bf16 %v1474_v4, %v1470_v2  ;;  %v1480_v7 = vld [vmem:[#allocation2 + $0x28] sm:$0xff]  ;;  %v1482_v8 = vld [vmem:[#allocation2 + $0x30] sm:$0xff]  ;;  %v1486_v10 = vld [vmem:[#allocation2 + $0x38] sm:$0xff] }
  0x4e   :  { %968 = vmatprep.subr.bf16.mxu0 %v117_v3  ;;  %v119_v9 = vpack.c.bf16 %v1480_v7, %v1478_v6  ;;  %v1202_v11 = vld [vmem:[#allocation5] sm:$0xff]   ;;  %v120_v12 = vpack.c.bf16 %v1486_v10, %v1482_v8  ;;  %v1492_v14 = vld [vmem:[#allocation2 + $0x48] sm:$0xff]  ;;  %v1496_v16 = vld [vmem:[#allocation2 + $0x50] sm:$0xff] }
  0x4f   :  { %969 = vmatpush3.bf16.msra.mxu0 %v117_v3  ;;  %984 = vmatprep.mubr.bf16.mxu0 %v1202_v11  ;;  %v1490_v13 = vld [vmem:[#allocation2 + $0x40] sm:$0xff]  ;;  %v287_v18 = vld [vmem:[#allocation7 + $0x8] sm:$0xff]  ;;  %v1498_v19 = vld [vmem:[#allocation2 + $0x58] sm:$0xff] }
  0x50   :  { %970 = vmatprep.subr.bf16.mxu0 %v118_v5  ;;  %v121_v15 = vpack.c.bf16 %v1492_v14, %v1490_v13  ;;  %v286_v17 = vld [vmem:[#allocation7] sm:$0xff]  ;;  %v288_v21 = vld [vmem:[#allocation7 + $0x10] sm:$0xff]  ;;  %v289_v22 = vld [vmem:[#allocation7 + $0x18] sm:$0xff]  ;;  %v122_v26 = vpack.c.bf16 %v1498_v19, %v1496_v16 }
  0x51   :  { %v1112_v20 = vpack.c.bf16 %v287_v18, %v286_v17  ;;  %v1116_v23 = vpack.c.bf16 %v289_v22, %v288_v21  ;;  %v290_v24 = vld [vmem:[#allocation7 + $0x20] sm:$0xff]  ;;  %v291_v25 = vld [vmem:[#allocation7 + $0x28] sm:$0xff]  ;;  %v292_v30 = vld [vmem:[#allocation7 + $0x30] sm:$0xff] }
  0x52   :  { %v1502_v27 = vld [vmem:[#allocation2 + $0x60] sm:$0xff]  ;;  %v1504_v28 = vld [vmem:[#allocation2 + $0x68] sm:$0xff]  ;;  %v1120_v29 = vpack.c.bf16 %v291_v25, %v290_v24  ;;  %v293_v31 = vld [vmem:[#allocation7 + $0x38] sm:$0xff] }
  0x53   :  { %971 = vmatpush3.bf16.msra.mxu0 %v118_v5  ;;  %1113 = vmatprep.subr.bf16.mxu1 %v1112_v20  ;;  %v123_v32 = vpack.c.bf16 %v1504_v28, %v1502_v27  ;;  %v1508_v33 = vld [vmem:[#allocation2 + $0x70] sm:$0xff]  ;;  %v1510_v34 = vld [vmem:[#allocation2 + $0x78] sm:$0xff]  ;;  %v1124_v35 = vpack.c.bf16 %v293_v31, %v292_v30  ;;  %v294_v36 = vld [vmem:[#allocation7 + $0x40] sm:$0xff] }
  0x54   :  { %972 = vmatprep.subr.bf16.mxu0 %v119_v9  ;;  %1115 = vmatpush3.bf16.msra.mxu1 %v1112_v20  ;;  %v295_v37 = vld [vmem:[#allocation7 + $0x48] sm:$0xff]  ;;  %v124_v38 = vpack.c.bf16 %v1510_v34, %v1508_v33  ;;  %v296_v40 = vld [vmem:[#allocation7 + $0x50] sm:$0xff]  ;;  %v297_v41 = vld [vmem:[#allocation7 + $0x58] sm:$0xff] }
  0x55   :  { %1117 = vmatprep.subr.bf16.mxu1 %v1116_v23  ;;  %v1128_v39 = vpack.c.bf16 %v295_v37, %v294_v36  ;;  %v1132_v42 = vpack.c.bf16 %v297_v41, %v296_v40  ;;  %v1203_v43 = vld [vmem:[#allocation5 + $0x8] sm:$0xff]   ;;  %v298_v44 = vld [vmem:[#allocation7 + $0x60] sm:$0xff]  ;;  %v1204_v46 = vld [vmem:[#allocation5 + $0x10] sm:$0xff]  }
  0x56   :  { %v299_v45 = vld [vmem:[#allocation7 + $0x68] sm:$0xff]  ;;  %v1205_v48 = vld [vmem:[#allocation5 + $0x18] sm:$0xff]   ;;  %v1206_v49 = vld [vmem:[#allocation5 + $0x20] sm:$0xff]  }
  0x57   :  { %973 = vmatpush3.bf16.msra.mxu0 %v119_v9  ;;  %v1136_v47 = vpack.c.bf16 %v299_v45, %v298_v44  ;;  %v1207_v50 = vld [vmem:[#allocation5 + $0x28] sm:$0xff]   ;;  %v1208_v51 = vld [vmem:[#allocation5 + $0x30] sm:$0xff]   ;;  %v1209_v52 = vld [vmem:[#allocation5 + $0x38] sm:$0xff]  }
  0x58   :  { %974 = vmatprep.subr.bf16.mxu0 %v120_v12  ;;  %1119 = vmatpush3.bf16.msra.mxu1 %v1116_v23  ;;  %v300_v53 = vld [vmem:[#allocation7 + $0x70] sm:$0xff]  ;;  %v301_v54 = vld [vmem:[#allocation7 + $0x78] sm:$0xff]  ;;  %v502_v56 = vld [vmem:[#allocation8] sm:$0xff] }
  0x59   :  { %1121 = vmatprep.subr.bf16.mxu1 %v1120_v29  ;;  %v1140_v55 = vpack.c.bf16 %v301_v54, %v300_v53  ;;  %v503_v57 = vld [vmem:[#allocation8 + $0x8] sm:$0xff]  ;;  %v504_v58 = vld [vmem:[#allocation8 + $0x10] sm:$0xff]  ;;  %v505_v60 = vld [vmem:[#allocation8 + $0x18] sm:$0xff] }
  0x5a   :  { %v1144_v59 = vpack.c.bf16 %v503_v57, %v502_v56  ;;  %v1148_v61 = vpack.c.bf16 %v505_v60, %v504_v58  ;;  %v506_v62 = vld [vmem:[#allocation8 + $0x20] sm:$0xff]  ;;  %v507_v63 = vld [vmem:[#allocation8 + $0x28] sm:$0xff]  ;;  %v508_v5 = vld [vmem:[#allocation8 + $0x30] sm:$0xff] }
  0x5b   :  { %975 = vmatpush3.bf16.msra.mxu0 %v120_v12  ;;  %v1152_v3 = vpack.c.bf16 %v507_v63, %v506_v62  ;;  %v509_v9 = vld [vmem:[#allocation8 + $0x38] sm:$0xff]  ;;  %v510_v12 = vld [vmem:[#allocation8 + $0x40] sm:$0xff]  ;;  %v512_v18 = vld [vmem:[#allocation8 + $0x50] sm:$0xff] }
  0x5c   :  { %976 = vmatprep.subr.bf16.mxu0 %v121_v15  ;;  %1123 = vmatpush3.bf16.msra.mxu1 %v1120_v29  ;;  %v1156_v11 = vpack.c.bf16 %v509_v9, %v508_v5  ;;  %v513_v20 = vld [vmem:[#allocation8 + $0x58] sm:$0xff]  ;;  %v514_v22 = vld [vmem:[#allocation8 + $0x60] sm:$0xff]  ;;  %v515_v23 = vld [vmem:[#allocation8 + $0x68] sm:$0xff] }
  0x5d   :  { %1125 = vmatprep.subr.bf16.mxu1 %v1124_v35  ;;  %v1164_v21 = vpack.c.bf16 %v513_v20, %v512_v18  ;;  %v1168_v24 = vpack.c.bf16 %v515_v23, %v514_v22 }
  0x5f   :  { %977 = vmatpush3.bf16.msra.mxu0 %v121_v15  ;;  %v511_v15 = vld [vmem:[#allocation8 + $0x48] sm:$0xff] }
  0x60   :  { %978 = vmatprep.subr.bf16.mxu0 %v122_v26  ;;  %1127 = vmatpush3.bf16.msra.mxu1 %v1124_v35  ;;  %v1160_v17 = vpack.c.bf16 %v511_v15, %v510_v12 }
  0x61   :  { %1129 = vmatprep.subr.bf16.mxu1 %v1128_v39 }
  0x63   :  { %979 = vmatpush3.bf16.msra.mxu0 %v122_v26 }
  0x64   :  { %980 = vmatprep.subr.bf16.mxu0 %v123_v32  ;;  %1131 = vmatpush3.bf16.msra.mxu1 %v1128_v39 }
  0x65   :  { %1133 = vmatprep.subr.bf16.mxu1 %v1132_v42 }
  0x67   :  { %981 = vmatpush3.bf16.msra.mxu0 %v123_v32 }
  0x68   :  { %982 = vmatprep.subr.bf16.mxu0 %v124_v38  ;;  %1135 = vmatpush3.bf16.msra.mxu1 %v1132_v42 }
  0x69   :  { %1137 = vmatprep.subr.bf16.mxu1 %v1136_v47 }
  0x6b   :  { %983 = vmatpush3.bf16.msra.mxu0 %v124_v38 }
  0x6c   :  { %1139 = vmatpush3.bf16.msra.mxu1 %v1136_v47  ;;  %1145 = vmatprep.subr.bf16.mxu0 %v1144_v59 }
  0x6d   :  { %1141 = vmatprep.subr.bf16.mxu1 %v1140_v55 }
  0x6e   :  { %985 = vmatmul.mubr.bf16.vlgmr.msra.gmra.mrb[0].mxu0 %v1203_v43 }
  0x6f   :  { %988 = vmatprep.mubr.bf16.mxu0 %v1204_v46  ;;  %1147 = vmatpush3.bf16.msra.mxu0 %v1144_v59 }
  0x70   :  { %1143 = vmatpush3.bf16.msra.mxu1 %v1140_v55  ;;  %1149 = vmatprep.subr.bf16.mxu0 %v1148_v61 }
  0x71   :  { %1176 = vmatprep.subr.bf16.mxu1 %v1144_v59 }
  0x73   :  { %1151 = vmatpush3.bf16.msra.mxu0 %v1148_v61 }
  0x74   :  { %1153 = vmatprep.subr.bf16.mxu0 %v1152_v3 }
  0x76   :  { %989 = vmatmul.mubr.bf16.gmra.mrb[4].mxu0 %v1205_v48 }
  0x77   :  { %992 = vmatprep.mubr.bf16.mxu0 %v1206_v49  ;;  %1155 = vmatpush3.bf16.msra.mxu0 %v1152_v3  ;;  %v516_v49 = vld [vmem:[#allocation8 + $0x70] sm:$0xff] }
  0x78   :  { %1157 = vmatprep.subr.bf16.mxu0 %v1156_v11 }
  0x7b   :  { %1159 = vmatpush3.bf16.msra.mxu0 %v1156_v11 }
  0x7c   :  { %1161 = vmatprep.subr.bf16.mxu0 %v1160_v17 }
  0x7e   :  { %993 = vmatmul.mubr.bf16.gmra.mrb[8].mxu0 %v1207_v50  ;;  %v517_v50 = vld [vmem:[#allocation8 + $0x78] sm:$0xff] }
  0x7f   :  { %996 = vmatprep.mubr.bf16.mxu0 %v1208_v51  ;;  %1163 = vmatpush3.bf16.msra.mxu0 %v1160_v17  ;;  %v1172_v51 = vpack.c.bf16 %v517_v50, %v516_v49 }
  0x80   :  { %1165 = vmatprep.subr.bf16.mxu0 %v1164_v21 }
  0x83   :  { %1167 = vmatpush3.bf16.msra.mxu0 %v1164_v21 }
  0x84   :  { %1169 = vmatprep.subr.bf16.mxu0 %v1168_v24 }
  0x86   :  { %997 = vmatmul.mubr.bf16.gmra.mrb[12].mxu0 %v1209_v52 }
  0x87   :  { %1171 = vmatpush3.bf16.msra.mxu0 %v1168_v24 }
  0x88   :  { %1173 = vmatprep.subr.bf16.mxu0 %v1172_v51 }
  0x8b   :  { %1175 = vmatpush3.bf16.msra.mxu0 %v1172_v51 }
 0x141   :  { %v986_v25 = vpop.f32.mrb[0].mxu0 }
 0x142   :  { %v223_v26 = vpop.f32.mrb[1].mxu0  ;;  %v232_v35 = vadd.f32 %v986_v25, %v1470_v2 }
 0x143   :  { %v987_v29 = vpop.f32.mrb[2].mxu0  ;;  %v224_v30 = vadd.f32 %v223_v26, %v1466_v0 }
 0x144   :  { %v226_v31 = vpop.f32.mrb[3].mxu0  ;;  %v235_v36 = vadd.f32 %v987_v29, %v1474_v4 }
 0x145   :  { %v227_v32 = vadd.f32 %v226_v31, %v1468_v1  ;;  %1032 = vmatprep.mubr.f32.mxu1 %v224_v30 }
 0x147   :  { %1033 = vmatmul.mubr.f32.vlgmr.msra.gmra.mrb[0].mxu1 %v227_v32 }
 0x148   :  { %1035 = vmatprep.mubr.f32.mxu1 %v232_v35  ;;  %1184 = vmatpush3.bf16.msra.mxu1 %v1144_v59 }
 0x149   :  { %v990_v37 = vpop.f32.mrb[4].mxu0  ;;  %1177 = vmatprep.subr.bf16.mxu1 %v1148_v61 }
 0x14a   :  { %v239_v38 = vpop.f32.mrb[5].mxu0  ;;  %v248_v1 = vadd.f32 %v990_v37, %v1482_v8 }
 0x14b   :  { %v240_v39 = vadd.f32 %v239_v38, %v1478_v6  ;;  %v991_v40 = vpop.f32.mrb[6].mxu0  ;;  %1036 = vmatmul.mubr.f32.gmra.mrb[2].mxu1 %v235_v36 }
 0x14c   :  { %v242_v41 = vpop.f32.mrb[7].mxu0  ;;  %1185 = vmatpush3.bf16.msra.mxu1 %v1148_v61  ;;  %v251_v2 = vadd.f32 %v991_v40, %v1486_v10 }
 0x14d   :  { %v243_v0 = vadd.f32 %v242_v41, %v1480_v7  ;;  %1038 = vmatprep.mubr.f32.mxu1 %v240_v39  ;;  %1178 = vmatprep.subr.bf16.mxu1 %v1152_v3 }
 0x14f   :  { %1039 = vmatmul.mubr.f32.gmra.mrb[4].mxu1 %v243_v0 }
 0x150   :  { %1041 = vmatprep.mubr.f32.mxu1 %v248_v1  ;;  %1186 = vmatpush3.bf16.msra.mxu1 %v1152_v3 }
 0x151   :  { %v994_v4 = vpop.f32.mrb[8].mxu0  ;;  %1179 = vmatprep.subr.bf16.mxu1 %v1156_v11 }
 0x152   :  { %v255_v42 = vpop.f32.mrb[9].mxu0  ;;  %v264_v8 = vadd.f32 %v994_v4, %v1496_v16 }
 0x153   :  { %v256_v6 = vadd.f32 %v255_v42, %v1490_v13  ;;  %v995_v43 = vpop.f32.mrb[10].mxu0  ;;  %1042 = vmatmul.mubr.f32.gmra.mrb[6].mxu1 %v251_v2 }
 0x154   :  { %v258_v44 = vpop.f32.mrb[11].mxu0  ;;  %1187 = vmatpush3.bf16.msra.mxu1 %v1156_v11  ;;  %v267_v10 = vadd.f32 %v995_v43, %v1498_v19 }
 0x155   :  { %v259_v7 = vadd.f32 %v258_v44, %v1492_v14  ;;  %1044 = vmatprep.mubr.f32.mxu1 %v256_v6  ;;  %1180 = vmatprep.subr.bf16.mxu1 %v1160_v17 }
 0x157   :  { %1045 = vmatmul.mubr.f32.gmra.mrb[8].mxu1 %v259_v7 }
 0x158   :  { %1047 = vmatprep.mubr.f32.mxu1 %v264_v8  ;;  %1188 = vmatpush3.bf16.msra.mxu1 %v1160_v17 }
 0x159   :  { %v998_v45 = vpop.f32.mrb[12].mxu0  ;;  %1181 = vmatprep.subr.bf16.mxu1 %v1164_v21 }
 0x15a   :  { %v271_v46 = vpop.f32.mrb[13].mxu0  ;;  %v280_v16 = vadd.f32 %v998_v45, %v1508_v33 }
 0x15b   :  { %v272_v13 = vadd.f32 %v271_v46, %v1502_v27  ;;  %v999_v47 = vpop.f32.mrb[14].mxu0  ;;  %1048 = vmatmul.mubr.f32.gmra.mrb[10].mxu1 %v267_v10  ;;  %v1533_v27 = vld [vmem:[%s1602_s3] ss:$0 sm:$0xff] }
 0x15c   :  { %v274_v48 = vpop.f32.mrb[15].mxu0  ;;  %1189 = vmatpush3.bf16.msra.mxu1 %v1164_v21  ;;  %v283_v19 = vadd.f32 %v999_v47, %v1510_v34 }
 0x15d   :  { %v275_v14 = vadd.f32 %v274_v48, %v1504_v28  ;;  %1050 = vmatprep.mubr.f32.mxu1 %v272_v13  ;;  %1182 = vmatprep.subr.bf16.mxu1 %v1168_v24 }
 0x15f   :  { %1051 = vmatmul.mubr.f32.gmra.mrb[12].mxu1 %v275_v14 }
 0x160   :  { %1053 = vmatprep.mubr.f32.mxu1 %v280_v16  ;;  %1190 = vmatpush3.bf16.msra.mxu1 %v1168_v24 }
 0x161   :  { %1183 = vmatprep.subr.bf16.mxu1 %v1172_v51 }
 0x163   :  { %1054 = vmatmul.mubr.f32.gmra.mrb[14].mxu1 %v283_v19 }
 0x164   :  { %1191 = vmatpush3.bf16.msra.mxu1 %v1172_v51 }
 0x21a   :  { %v1034_v28 = vpop.f32.mrb[0].mxu1 }
 0x21b   :  { %v381_v33 = vadd.f32 %v1034_v28, %v1533_v27  ;;  %v375_v52 = vpop.f32.mrb[1].mxu1 }
 0x21c   :  { %v376_v53 = vadd.f32 %v1533_v27, %v375_v52 }
 0x21d   :  { %v471_v34 = vmul.f32 0.01, %v381_v33  ;;  %vm455_vm0 = vcmp.gt.f32.partialorder %v381_v33, 0.0 }
 0x21e   :  { %v470_v54 = vmul.f32 0.01, %v376_v53  ;;  %v1037_v55 = vpop.f32.mrb[2].mxu1  ;;  %vm454_vm1 = vcmp.gt.f32.partialorder %v376_v53, 0.0 }
 0x21f   :  { %v391_v56 = vadd.f32 %v1037_v55, %v1533_v27  ;;  %v385_v57 = vpop.f32.mrb[3].mxu1  ;;  %v487_v60 = vsel %vm455_vm0, %v381_v33, %v471_v34  ;;  %v1554_v33 = vld [vmem:[%s1604_s5] ss:$0 sm:$0xff]  ;;  %s1360_s5 = smov [#allocation10]  }
 0x220   :  { %v386_v58 = vadd.f32 %v1533_v27, %v385_v57  ;;  %v486_v59 = vsel %vm454_vm1, %v376_v53, %v470_v54  ;;  %s850_s30 = sshll.u32 %s1360_s5, 4  ;;  %s851_s30 = int_to_ptr.vmem [resolvable:$true] %s850_s30 }
 0x221   :  { %v473_v61 = vmul.f32 0.01, %v391_v56  ;;  %1088 = vmatprep.mubr.f32.mxu0 %v486_v59  ;;  %vm457_vm3 = vcmp.gt.f32.partialorder %v391_v56, 0.0  ;;  %s1298_s8 = scalar_lea.vmem %s851_s30, 2048  ;;  %p1303_p5 = scmp.lt.s32.totalorder %s851_s30, %s851_s30 }
 0x222   :  { %v472_v62 = vmul.f32 0.01, %v386_v58  ;;  %v1040_v63 = vpop.f32.mrb[4].mxu1  ;;  %1089 = vmatmul.mubr.f32.vlgmr.msra.gmra.mrb[16].mxu0 %v487_v60  ;;  %vm456_vm2 = vcmp.gt.f32.partialorder %v386_v58, 0.0  ;;  %p1299_p4 = scmp.ne.s32.totalorder %s851_s30, %s1298_s8  ;;  %p1304_p6 = scmp.lt.s32.totalorder %s1298_s8, %s1298_s8 }
 0x223   :  { %v401_v3 = vadd.f32 %v1040_v63, %v1533_v27  ;;  %v395_v5 = vpop.f32.mrb[5].mxu1  ;;  %v489_v15 = vsel %vm457_vm3, %v391_v56, %v473_v61 }
 0x224   :  { %v396_v9 = vadd.f32 %v1533_v27, %v395_v5  ;;  %v488_v11 = vsel %vm456_vm2, %v386_v58, %v472_v62  ;;  %p1305_p7 = por %p1304_p6, %p1303_p5 }
 0x225   :  { %v475_v12 = vmul.f32 0.01, %v401_v3  ;;  %1091 = vmatprep.mubr.f32.mxu0 %v488_v11  ;;  %vm459_vm5 = vcmp.gt.f32.partialorder %v401_v3, 0.0 }
 0x226   :  { %v474_v17 = vmul.f32 0.01, %v396_v9  ;;  %v1043_v18 = vpop.f32.mrb[6].mxu1  ;;  %1092 = vmatmul.mubr.f32.gmra.mrb[18].mxu0 %v489_v15  ;;  %vm458_vm4 = vcmp.gt.f32.partialorder %v396_v9, 0.0  ;;  %p1306_p8 = pnand %p1305_p7, %p1299_p4 }
 0x227   :  { %v411_v20 = vadd.f32 %v1043_v18, %v1533_v27  ;;  %v405_v21 = vpop.f32.mrb[7].mxu1  ;;  %v491_v25 = vsel %vm459_vm5, %v401_v3, %v475_v12 }
 0x228   :  { %v406_v22 = vadd.f32 %v1533_v27, %v405_v21  ;;  %v490_v23 = vsel %vm458_vm4, %v396_v9, %v474_v17 }
 0x229   :  { %v477_v24 = vmul.f32 0.01, %v411_v20  ;;  %1094 = vmatprep.mubr.f32.mxu0 %v490_v23  ;;  %vm461_vm7 = vcmp.gt.f32.partialorder %v411_v20, 0.0 }
 0x22a   :  { %v476_v26 = vmul.f32 0.01, %v406_v22  ;;  %v1046_v29 = vpop.f32.mrb[8].mxu1  ;;  %1095 = vmatmul.mubr.f32.gmra.mrb[20].mxu0 %v491_v25  ;;  %vm460_vm6 = vcmp.gt.f32.partialorder %v406_v22, 0.0 }
 0x22b   :  { %v421_v30 = vadd.f32 %v1046_v29, %v1533_v27  ;;  %v415_v31 = vpop.f32.mrb[9].mxu1  ;;  %v493_v37 = vsel %vm461_vm7, %v411_v20, %v477_v24 }
 0x22c   :  { %v416_v32 = vadd.f32 %v1533_v27, %v415_v31  ;;  %v492_v35 = vsel %vm460_vm6, %v406_v22, %v476_v26 }
 0x22d   :  { %v479_v36 = vmul.f32 0.01, %v421_v30  ;;  %1097 = vmatprep.mubr.f32.mxu0 %v492_v35  ;;  %vm463_vm8 = vcmp.gt.f32.partialorder %v421_v30, 0.0 }
 0x22e   :  { %v478_v38 = vmul.f32 0.01, %v416_v32  ;;  %v1049_v39 = vpop.f32.mrb[10].mxu1  ;;  %1098 = vmatmul.mubr.f32.gmra.mrb[22].mxu0 %v493_v37  ;;  %vm462_vm9 = vcmp.gt.f32.partialorder %v416_v32, 0.0 }
 0x22f   :  { %v431_v40 = vadd.f32 %v1049_v39, %v1533_v27  ;;  %v425_v41 = vpop.f32.mrb[11].mxu1  ;;  %v495_v2 = vsel %vm463_vm8, %v421_v30, %v479_v36 }
 0x230   :  { %v426_v0 = vadd.f32 %v1533_v27, %v425_v41  ;;  %v494_v1 = vsel %vm462_vm9, %v416_v32, %v478_v38 }
 0x231   :  { %v481_v4 = vmul.f32 0.01, %v431_v40  ;;  %1100 = vmatprep.mubr.f32.mxu1 %v494_v1  ;;  %vm465_vm11 = vcmp.gt.f32.partialorder %v431_v40, 0.0 }
 0x232   :  { %v480_v42 = vmul.f32 0.01, %v426_v0  ;;  %v1052_v6 = vpop.f32.mrb[12].mxu1  ;;  %1101 = vmatmul.mubr.f32.vlgmr.msra.gmra.mrb[16].mxu1 %v495_v2  ;;  %vm464_vm10 = vcmp.gt.f32.partialorder %v426_v0, 0.0 }
 0x233   :  { %v441_v43 = vadd.f32 %v1052_v6, %v1533_v27  ;;  %v435_v44 = vpop.f32.mrb[13].mxu1  ;;  %v497_v45 = vsel %vm465_vm11, %v431_v40, %v481_v4 }
 0x234   :  { %v436_v7 = vadd.f32 %v1533_v27, %v435_v44  ;;  %v496_v8 = vsel %vm464_vm10, %v426_v0, %v480_v42 }
 0x235   :  { %v483_v10 = vmul.f32 0.01, %v441_v43  ;;  %1103 = vmatprep.mubr.f32.mxu1 %v496_v8  ;;  %vm467_vm13 = vcmp.gt.f32.partialorder %v441_v43, 0.0 }
 0x236   :  { %v482_v46 = vmul.f32 0.01, %v436_v7  ;;  %v1055_v13 = vpop.f32.mrb[14].mxu1  ;;  %1104 = vmatmul.mubr.f32.gmra.mrb[18].mxu1 %v497_v45  ;;  %vm466_vm12 = vcmp.gt.f32.partialorder %v436_v7, 0.0 }
 0x237   :  { %v451_v47 = vadd.f32 %v1055_v13, %v1533_v27  ;;  %v445_v48 = vpop.f32.mrb[15].mxu1  ;;  %v499_v49 = vsel %vm467_vm13, %v441_v43, %v483_v10 }
 0x238   :  { %v446_v14 = vadd.f32 %v1533_v27, %v445_v48  ;;  %v498_v16 = vsel %vm466_vm12, %v436_v7, %v482_v46 }
 0x239   :  { %v485_v19 = vmul.f32 0.01, %v451_v47  ;;  %1106 = vmatprep.mubr.f32.mxu1 %v498_v16  ;;  %vm469_vm15 = vcmp.gt.f32.partialorder %v451_v47, 0.0 }
 0x23a   :  { %v484_v50 = vmul.f32 0.01, %v446_v14  ;;  %1107 = vmatmul.mubr.f32.gmra.mrb[20].mxu1 %v499_v49  ;;  %vm468_vm14 = vcmp.gt.f32.partialorder %v446_v14, 0.0 }
 0x23b   :  { %v501_v28 = vsel %vm469_vm15, %v451_v47, %v485_v19 }
 0x23c   :  { %v500_v51 = vsel %vm468_vm14, %v446_v14, %v484_v50 }
 0x23d   :  { %1109 = vmatprep.mubr.f32.mxu1 %v500_v51 }
 0x23e   :  { %1110 = vmatmul.mubr.f32.gmra.mrb[22].mxu1 %v501_v28 }
 0x2f5   :  { %v1090_v52 = vpop.f32.mrb[16].mxu0 }
 0x2f6   :  { %v597_v27 = vadd.f32 %v1090_v52, %v1554_v33  ;;  %v591_v53 = vpop.f32.mrb[17].mxu0 }
 0x2f7   :  { %v592_v34 = vadd.f32 %v1554_v33, %v591_v53 }
 0x2f8   :  { %671 = vst [vmem:[#allocation10 + $0x8] sm:$0xff] %v597_v27  ;;  %v806_v54 = vmul.f32 %v597_v27, %v597_v27 }
 0x2f9   :  { %670 = vst [vmem:[#allocation10] sm:$0xff] %v592_v34  ;;  %v784_v55 = vadd.f32 %v597_v27, %v592_v34  ;;  %v805_v56 = vmul.f32 %v592_v34, %v592_v34  ;;  %v1093_v57 = vpop.f32.mrb[18].mxu0 }
 0x2fa   :  { %v607_v58 = vadd.f32 %v1093_v57, %v1554_v33  ;;  %v601_v59 = vpop.f32.mrb[19].mxu0 }
 0x2fb   :  { %v821_v60 = vadd.f32 %v806_v54, %v805_v56  ;;  %v602_v61 = vadd.f32 %v1554_v33, %v601_v59 }
 0x2fc   :  { %673 = vst [vmem:[#allocation10 + $0x18] sm:$0xff] %v607_v58  ;;  %v808_v11 = vmul.f32 %v607_v58, %v607_v58 }
 0x2fd   :  { %672 = vst [vmem:[#allocation10 + $0x10] sm:$0xff] %v602_v61  ;;  %v785_v62 = vadd.f32 %v784_v55, %v602_v61  ;;  %v807_v63 = vmul.f32 %v602_v61, %v602_v61  ;;  %v1096_v3 = vpop.f32.mrb[20].mxu0 }
 0x2fe   :  { %v617_v5 = vadd.f32 %v1096_v3, %v1554_v33  ;;  %v611_v9 = vpop.f32.mrb[21].mxu0 }
 0x2ff   :  { %v822_v12 = vadd.f32 %v821_v60, %v807_v63  ;;  %v612_v15 = vadd.f32 %v1554_v33, %v611_v9  ;;  %v786_v17 = vadd.f32 %v785_v62, %v607_v58 }
 0x300   :  { %675 = vst [vmem:[#allocation10 + $0x28] sm:$0xff] %v617_v5  ;;  %v773_v18 = vmul.f32 0.0, %v617_v5 }
 0x301   :  { %674 = vst [vmem:[#allocation10 + $0x20] sm:$0xff] %v612_v15  ;;  %v772_v20 = vmul.f32 0.0, %v612_v15  ;;  %v823_v21 = vadd.f32 %v822_v12, %v808_v11  ;;  %v1099_v22 = vpop.f32.mrb[22].mxu0 }
 0x302   :  { %v627_v23 = vadd.f32 %v1099_v22, %v1554_v33  ;;  %v621_v24 = vpop.f32.mrb[23].mxu0  ;;  %v810_v30 = vmul.f32 %v773_v18, %v773_v18 }
 0x303   :  { %v787_v25 = vadd.f32 %v786_v17, %v772_v20  ;;  %v809_v26 = vmul.f32 %v772_v20, %v772_v20  ;;  %v622_v29 = vadd.f32 %v1554_v33, %v621_v24 }
 0x304   :  { %677 = vst [vmem:[#allocation10 + $0x38] sm:$0xff] %v627_v23  ;;  %v775_v32 = vmul.f32 0.0, %v627_v23 }
 0x305   :  { %v824_v31 = vadd.f32 %v823_v21, %v809_v26  ;;  %676 = vst [vmem:[#allocation10 + $0x30] sm:$0xff] %v622_v29  ;;  %v774_v35 = vmul.f32 0.0, %v622_v29  ;;  %v788_v36 = vadd.f32 %v787_v25, %v773_v18  ;;  %v1102_v37 = vpop.f32.mrb[16].mxu1 }
 0x306   :  { %v637_v38 = vadd.f32 %v1102_v37, %v1554_v33  ;;  %v631_v39 = vpop.f32.mrb[17].mxu1  ;;  %v812_v4 = vmul.f32 %v775_v32, %v775_v32 }
 0x307   :  { %v789_v40 = vadd.f32 %v788_v36, %v774_v35  ;;  %v811_v41 = vmul.f32 %v774_v35, %v774_v35  ;;  %v825_v0 = vadd.f32 %v824_v31, %v810_v30  ;;  %v632_v1 = vadd.f32 %v1554_v33, %v631_v39 }
 0x308   :  { %679 = vst [vmem:[#allocation10 + $0x48] sm:$0xff] %v637_v38  ;;  %v777_v2 = vmul.f32 0.0, %v637_v38 }
 0x309   :  { %v826_v42 = vadd.f32 %v825_v0, %v811_v41  ;;  %678 = vst [vmem:[#allocation10 + $0x40] sm:$0xff] %v632_v1  ;;  %v776_v6 = vmul.f32 0.0, %v632_v1  ;;  %v790_v43 = vadd.f32 %v789_v40, %v775_v32  ;;  %v1105_v44 = vpop.f32.mrb[18].mxu1 }
 0x30a   :  { %v647_v7 = vadd.f32 %v1105_v44, %v1554_v33  ;;  %v641_v8 = vpop.f32.mrb[19].mxu1  ;;  %v814_v47 = vmul.f32 %v777_v2, %v777_v2 }
 0x30b   :  { %v791_v10 = vadd.f32 %v790_v43, %v776_v6  ;;  %v813_v45 = vmul.f32 %v776_v6, %v776_v6  ;;  %v827_v46 = vadd.f32 %v826_v42, %v812_v4  ;;  %v642_v13 = vadd.f32 %v1554_v33, %v641_v8 }
 0x30c   :  { %681 = vst [vmem:[#allocation10 + $0x58] sm:$0xff] %v647_v7  ;;  %v779_v14 = vmul.f32 0.0, %v647_v7 }
 0x30d   :  { %v828_v48 = vadd.f32 %v827_v46, %v813_v45  ;;  %680 = vst [vmem:[#allocation10 + $0x50] sm:$0xff] %v642_v13  ;;  %v778_v16 = vmul.f32 0.0, %v642_v13  ;;  %v792_v19 = vadd.f32 %v791_v10, %v777_v2  ;;  %v1108_v49 = vpop.f32.mrb[20].mxu1 }
 0x30e   :  { %v657_v50 = vadd.f32 %v1108_v49, %v1554_v33  ;;  %v651_v51 = vpop.f32.mrb[21].mxu1  ;;  %v816_v54 = vmul.f32 %v779_v14, %v779_v14 }
 0x30f   :  { %v793_v28 = vadd.f32 %v792_v19, %v778_v16  ;;  %v815_v52 = vmul.f32 %v778_v16, %v778_v16  ;;  %v829_v27 = vadd.f32 %v828_v48, %v814_v47  ;;  %v652_v53 = vadd.f32 %v1554_v33, %v651_v51 }
 0x310   :  { %683 = vst [vmem:[#allocation10 + $0x68] sm:$0xff] %v657_v50  ;;  %v781_v34 = vmul.f32 0.0, %v657_v50 }
 0x311   :  { %v830_v55 = vadd.f32 %v829_v27, %v815_v52  ;;  %682 = vst [vmem:[#allocation10 + $0x60] sm:$0xff] %v652_v53  ;;  %v780_v56 = vmul.f32 0.0, %v652_v53  ;;  %v794_v57 = vadd.f32 %v793_v28, %v779_v14  ;;  %v1111_v58 = vpop.f32.mrb[22].mxu1 }
 0x312   :  { %v667_v59 = vadd.f32 %v1111_v58, %v1554_v33  ;;  %v661_v60 = vpop.f32.mrb[23].mxu1  ;;  %v818_v5 = vmul.f32 %v781_v34, %v781_v34 }
 0x313   :  { %v795_v61 = vadd.f32 %v794_v57, %v780_v56  ;;  %v817_v62 = vmul.f32 %v780_v56, %v780_v56  ;;  %v831_v63 = vadd.f32 %v830_v55, %v816_v54  ;;  %v662_v3 = vadd.f32 %v1554_v33, %v661_v60 }
 0x314   :  { %685 = vst [vmem:[#allocation10 + $0x78] sm:$0xff] %v667_v59  ;;  %v783_v11 = vmul.f32 0.0, %v667_v59 }
 0x315   :  { %v832_v9 = vadd.f32 %v831_v63, %v817_v62  ;;  %684 = vst [vmem:[#allocation10 + $0x70] sm:$0xff] %v662_v3  ;;  %v782_v12 = vmul.f32 0.0, %v662_v3  ;;  %v796_v15 = vadd.f32 %v795_v61, %v781_v34 }
 0x316   :  { %1309 = shalt.err (!%p1306_p8)
}
 0x317   :  { %s1310_s11 = scalar_lea.hbm %s1605_s6, 2048 }
 0x318   :  { %p1311_p9 = scmp.ne.s32.totalorder %s1605_s6, %s1310_s11  ;;  %p1314_p10 = scmp.lt.u32.totalorder %s1310_s11, %s1605_s6 }
 0x31a   :  { %p1316_p11 = pnand %p1314_p10, %p1311_p9 }
 0x31c   :  { %1319 = shalt.err (!%p1316_p11)
}
 0x31d   :  { %856 = dma.vmem_to_hbm [thread:$0]  %s851_s30, 2048, %s1605_s6, [#allocation4], %s1356_s1, %s1356_s1, %s1357_s25   ;;  %v797_v33 = vadd.f32 %v796_v15, %v782_v12  ;;  %v819_v17 = vmul.f32 %v782_v12, %v782_v12  ;;  %v833_v18 = vadd.f32 %v832_v9, %v818_v5  ;;  %v820_v20 = vmul.f32 %v783_v11, %v783_v11 }
 0x31e   :  { %s1361_s17 = smov [#allocation11]   ;;  %vm842_vm0 = vcmask 1040384  }
 0x31f   :  { %v798_v21 = vadd.f32 %v797_v33, %v783_v11  ;;  %v834_v22 = vadd.f32 %v833_v18, %v819_v17  ;;  %s863_s18 = sshll.u32 %s1361_s17, 4  ;;  %s864_s18 = int_to_ptr.vmem [resolvable:$true] %s863_s18 }
 0x320   :  { %s1320_s6 = scalar_lea.vmem %s864_s18, 32  ;;  %p1325_p13 = scmp.lt.s32.totalorder %s864_s18, %s864_s18 }
 0x321   :  { %v799_v23 = vrot.slane %v798_v21, 4  ;;  %v835_v24 = vadd.f32 %v834_v22, %v820_v20  ;;  %p1321_p12 = scmp.ne.s32.totalorder %s864_s18, %s1320_s6  ;;  %p1326_p0 = scmp.lt.s32.totalorder %s1320_s6, %s1320_s6 }
 0x323   :  { %v800_v25 = vadd.f32 %v799_v23, %v798_v21  ;;  %v836_v26 = vrot.slane %v835_v24, 4  ;;  %p1327_p1 = por %p1326_p0, %p1325_p13 }
 0x325   :  { %v801_v29 = vrot.slane %v800_v25, 2  ;;  %v837_v30 = vadd.f32 %v836_v26, %v835_v24  ;;  %p1328_p2 = pnand %p1327_p1, %p1321_p12 }
 0x327   :  { %v802_v31 = vadd.f32 %v801_v29, %v800_v25  ;;  %v838_v32 = vrot.slane %v837_v30, 2 }
 0x329   :  { %v803_v35 = vrot.slane %v802_v31, 1  ;;  %v839_v36 = vadd.f32 %v838_v32, %v837_v30 }
 0x32b   :  { %v840_v37 = vrot.slane %v839_v36, 1  ;;  %v804_v38 = vadd.f32 %v803_v35, %v802_v31 }
 0x32d   :  { %v841_v39 = vadd.f32 %v840_v37, %v839_v36 }
 0x32f   :  { %v843_v40 = vsel %vm842_vm0, %v804_v38, %v841_v39 }
 0x330   :  { %844 = vst [vmem:[#allocation11] sm:$0x3] %v843_v40 }
 0x331   :  { %1331 = shalt.err (!%p1328_p2)
}
 0x332   :  { %s1332_s19 = scalar_lea.hbm %s1606_s7, 32 }
 0x333   :  { %p1333_p3 = scmp.ne.s32.totalorder %s1606_s7, %s1332_s19  ;;  %p1336_p4 = scmp.lt.u32.totalorder %s1332_s19, %s1606_s7 }
 0x335   :  { %p1338_p5 = pnand %p1336_p4, %p1333_p3 }
 0x337   :  { %1341 = shalt.err (!%p1338_p5)
}
 0x338   :  { %866 = dma.vmem_to_hbm [thread:$0]  %s864_s18, 32, %s1606_s7, [#allocation12]  }
 0x339   :  { %1348 = dma.done.wait [#allocation4], 2048  }
 0x33a   :  { %1349 = vsyncadd [#allocation4], 4294965248 }
 0x33b   :  { %1350 = dma.done.wait [#allocation12], 32  }
 0x33c   :  { %1351 = vsyncadd [#allocation12], 4294967264 }
 0x33d   :  { %873 = vsyncpa [#allocation3], 1 }
 0x33e   :  { %874 = vsyncpa [#allocation6], 1 }
 0x33f   :  { %875 = vsyncpa [#allocation9], 1 }
 0x340   :  { %876 = vsyncpa [#allocation4], 1 }
 0x341   :  { %877 = vsyncpa [#allocation12], 1 }

</bundles_post_ra>
